<compile_context>
chip_gen: v6e
topology: v6e:2x2x1
jax: 0.10.0
libtpu: 0.0.40
codegen_flags: <defaults>
</compile_context>

<pallas_src>
import jax
import jax.numpy as jnp
from jax.experimental import pallas as pl
from jax.experimental.pallas import tpu as pltpu

_LANE = 128
_MAX_CHUNKS = 8              # concurrent DMAs to keep the HBM controller busy
_MIN_CHUNK_BYTES = 1 << 20   # don't split below ~1 MiB per chunk


def _make_dma_copy_kernel(chunks):
    """Build a kernel that copies the given [(row_start, row_size), ...]
    slices of the input HBM ref into the output HBM ref with concurrent DMAs."""

    def kernel(x_hbm, o_hbm, sem):
        copies = []
        for k, (start, size) in enumerate(chunks):
            cp = pltpu.make_async_copy(
                x_hbm.at[pl.ds(start, size)],
                o_hbm.at[pl.ds(start, size)],
                sem.at[k],
            )
            cp.start()
            copies.append(cp)
        for cp in copies:
            cp.wait()

    return kernel


def identity_forward(x):
    """Identity forward pass as a direct HBM->HBM chunked-DMA Pallas kernel."""
    orig_shape = x.shape
    total = x.size
    if total == 0:
        return x

    itemsize = jnp.dtype(x.dtype).itemsize

    # Flat view: lane-dense 2-D slab when the element count allows it (cheap
    # metadata reshape of a contiguous buffer), plain 1-D otherwise.  Either
    # way the DMAs copy the exact byte range — no pad, no post-slice.
    if total % _LANE == 0:
        view = x.reshape(total // _LANE, _LANE)
    else:
        view = x.reshape(total)
    rows = view.shape[0]

    # Static (trace-time) split of the leading dim into a few DMA chunks.
    # Small tensors collapse to a single whole-array DMA.
    total_bytes = total * itemsize
    n_chunks = max(
        1,
        min(_MAX_CHUNKS, rows,
            (total_bytes + _MIN_CHUNK_BYTES - 1) // _MIN_CHUNK_BYTES),
    )
    base, rem = divmod(rows, n_chunks)
    chunks, start = [], 0
    for k in range(n_chunks):
        size = base + (1 if k < rem else 0)
        chunks.append((start, size))
        start += size

    out = pl.pallas_call(
        _make_dma_copy_kernel(chunks),
        out_shape=jax.ShapeDtypeStruct(view.shape, view.dtype),
        in_specs=[pl.BlockSpec(memory_space=pl.ANY)],   # raw HBM ref, no auto-DMA
        out_specs=pl.BlockSpec(memory_space=pl.ANY),    # output stays in HBM
        scratch_shapes=[pltpu.SemaphoreType.DMA((n_chunks,))],
    )(view)

    return out.reshape(orig_shape)


if __name__ == "__main__":
    key = jax.random.PRNGKey(0)
    # Small NCHW-style input (batch=2, channels=4, spatial=16x16).
    x = jax.random.normal(key, (2, 4, 16, 16), dtype=jnp.float32)

    y = identity_forward(x)
    y = jax.block_until_ready(y)

    assert y.shape == x.shape and y.dtype == x.dtype
    assert bool(jnp.all(y == x))
    print("KERNEL_OK")
</pallas_src>

<mosaic_0001>
module attributes {stable_mosaic.version = 11 : i64} {
  func.func @kernel(%arg0: memref<16x128xf32, #tpu.memory_space<any>>, %arg1: memref<16x128xf32, #tpu.memory_space<any>>, %arg2: memref<1x!tpu.dma_semaphore, #tpu.memory_space<semaphore_mem>>) attributes {dimension_semantics = [], scalar_prefetch = 0 : i64, scratch_operands = 1 : i64, tpu.core_type = #tpu.core_type<tc>} {
    %c0_i32 = arith.constant 0 : i32
    %c0_i32_0 = arith.constant 0 : i32
    %c0_i32_1 = arith.constant 0 : i32
    %0 = tpu.memref_slice %arg0[%c0_i32_0, %c0_i32_1] : memref<16x128xf32, #tpu.memory_space<any>> -> memref<16x128xf32, #tpu.memory_space<any>>
    %c0_i32_2 = arith.constant 0 : i32
    %c0_i32_3 = arith.constant 0 : i32
    %1 = tpu.memref_slice %arg1[%c0_i32_2, %c0_i32_3] : memref<16x128xf32, #tpu.memory_space<any>> -> memref<16x128xf32, #tpu.memory_space<any>>
    %2 = tpu.memref_slice %arg2[%c0_i32] : memref<1x!tpu.dma_semaphore, #tpu.memory_space<semaphore_mem>> -> memref<1x!tpu.dma_semaphore, #tpu.memory_space<semaphore_mem>>
    %3 = tpu.memref_squeeze %2 : memref<1x!tpu.dma_semaphore, #tpu.memory_space<semaphore_mem>> -> memref<!tpu.dma_semaphore, #tpu.memory_space<semaphore_mem>>
    tpu.enqueue_dma source(%0 : memref<16x128xf32, #tpu.memory_space<any>>) target(%1 : memref<16x128xf32, #tpu.memory_space<any>>) target_semaphore(%3 : memref<!tpu.dma_semaphore, #tpu.memory_space<semaphore_mem>>)
    %c0_i32_4 = arith.constant 0 : i32
    %c0_i32_5 = arith.constant 0 : i32
    %c0_i32_6 = arith.constant 0 : i32
    %4 = tpu.memref_slice %arg0[%c0_i32_5, %c0_i32_6] : memref<16x128xf32, #tpu.memory_space<any>> -> memref<16x128xf32, #tpu.memory_space<any>>
    %c0_i32_7 = arith.constant 0 : i32
    %c0_i32_8 = arith.constant 0 : i32
    %5 = tpu.memref_slice %arg1[%c0_i32_7, %c0_i32_8] : memref<16x128xf32, #tpu.memory_space<any>> -> memref<16x128xf32, #tpu.memory_space<any>>
    %6 = tpu.memref_slice %arg2[%c0_i32_4] : memref<1x!tpu.dma_semaphore, #tpu.memory_space<semaphore_mem>> -> memref<1x!tpu.dma_semaphore, #tpu.memory_space<semaphore_mem>>
    %7 = tpu.memref_squeeze %6 : memref<1x!tpu.dma_semaphore, #tpu.memory_space<semaphore_mem>> -> memref<!tpu.dma_semaphore, #tpu.memory_space<semaphore_mem>>
    tpu.wait_dma2 semaphore(%7 : memref<!tpu.dma_semaphore, #tpu.memory_space<semaphore_mem>>) src(%4 : memref<16x128xf32, #tpu.memory_space<any>>) dst(%5 : memref<16x128xf32, #tpu.memory_space<any>>)
    return
  }
}

</mosaic_0001>

<bundles_post_ra>
// kernel: tpu_custom_call.1
= control target key start
LH: loop header
LB: loop body
LE: loop exit
PB: predicated region body
PF: predicated region fallthrough
CT: control target
= control target key end

     0   :  { %s28_s6 = smov [#allocation2]   ;;  %s29_s7 = smov 131072   ;;  %s47_s0 = inlined_call_operand.hbm [shape: f32[16,128], index: 0, kind: input, shape index: {}]   ;;  %s48_s1 = inlined_call_operand.hbm [shape: f32[16,128], index: 1, kind: output, shape index: {}]  }
   0x1   :  { %s30_s8 = smov 0  }
   0x2   :  { %12 = dma.general %s47_s0, 256, %s48_s1, %s28_s6, %s29_s7, [#allocation4], %s30_s8, 0  }
   0x3   :  { %26 = dma.done.wait [#allocation2], 256 }
   0x4   :  { %27 = vsyncadd [#allocation2], 4294967040 }
   0x5   :  { %16 = vsyncmov [#allocation2] }
   0x8   :  { %s17_s13 = vpop.sfrf %16 }
   0x9   :  { %p22_p0 = scmp.ne.s32.totalorder %s17_s13, 0 }
   0xb   :  { %21 = shalt.err (%p22_p0)  }

</bundles_post_ra>
